<compile_context>
chip_gen: v7x
topology: tpu7x:2x2x1
jax: 0.10.0
libtpu: 0.0.40
codegen_flags: <defaults>
</compile_context>

<pallas_src>
import functools

import jax
import jax.numpy as jnp
from jax.experimental import pallas as pl
from jax.experimental.pallas import tpu as pltpu

BN_EPS = 1e-5


def _choose_tile_n(n, c_in, f, target, out_bytes, budget_bytes=24 << 20):
    """Pick the N-tile width and padded N.

    Returns (TN, N_pad).  TN is either the full N (small inputs; full-extent
    blocks are always legal) or a multiple of 128 bounded so that the
    double-buffered x/out tiles plus resident weights fit `budget_bytes`
    (safe for v7x's 64 MiB physical / 32 MiB scoped-default VMEM).
    """
    per_col = 2 * (c_in * 4 + f * out_bytes)          # dbl-buffered x + out cols
    const_bytes = 2 * (f * c_in + 2 * f + f * f) * 4  # (possibly dbl-buffered) params
    avail = max(budget_bytes - const_bytes, 128 * per_col)
    tn_cap = max(128, (avail // per_col) // 128 * 128)
    tn = max(128, min((max(target, 128) // 128) * 128, tn_cap))
    if n <= tn:
        return n, n                                    # full-extent tile, no pad
    n_pad = ((n + tn - 1) // tn) * tn                  # pad instead of full-N tile
    return tn, n_pad


def apply_kernel(x_ref, w1_ref, shift_ref, w2_ref, b2_ref, o_ref, *, conv2_dtype):
    """conv1 (BN-scale folded) + BN shift + ReLU + conv2, channel-first tile.

    x_ref:     (1, C_in, TN)  channel-first input tile
    w1_ref:    (F, C_in)      Conv1d #1 weight with BN scale folded in
    shift_ref: (F, 1)         beta - mean_h * scale (BN shift; absorbs b1)
    w2_ref:    (F, F)         Conv1d #2 weight (out, in)
    b2_ref:    (F, 1)
    o_ref:     (1, F, TN)     output tile, lane-dense along N
    """
    x = x_ref[0]                 # (C_in, TN)
    w1 = w1_ref[...]             # (F, C_in), BN scale already folded
    c_in = x.shape[0]

    # K = C_in (=3) contraction as broadcast FMAs on the VPU in fp32
    # (MXU would waste >97% of a pass on a K=3 contraction; v5e-safe).
    h = w1[:, 0:1] * x[0:1, :]                                   # (F, TN)
    for c in range(1, c_in):
        h = h + w1[:, c:c + 1] * x[c:c + 1, :]

    # Folded BatchNorm shift + ReLU (scale already in w1 -> single add here).
    h = jnp.maximum(h + shift_ref[...], 0.0)                     # (F, TN)

    # conv2 on the MXU: (F_out, F_in) @ (F_in, TN) -> already channel-first,
    # lane-dense along N.  bf16 operands by default, fp32 accumulation.
    out = jnp.dot(w2_ref[...].astype(conv2_dtype), h.astype(conv2_dtype),
                  preferred_element_type=jnp.float32)
    out = out + b2_ref[...]

    o_ref[...] = out[None].astype(o_ref.dtype)


def position_embedding_learned(xyz, params, *, tile_n=2048,
                               out_dtype=jnp.bfloat16,
                               conv2_dtype=jnp.bfloat16):
    """xyz: (B, N, C_in) -> (B, F, N), matching the PyTorch module output."""
    B, N, C_in = xyz.shape
    F = params['w1'].shape[0]

    x32 = xyz.astype(jnp.float32)
    w1 = params['w1'].astype(jnp.float32)                        # (F, C_in)

    # ---- BN statistics from C_in-dim moments of x (exact; plain XLA) ----
    # conv1 is linear and b1 is cancelled by the BN mean subtraction, so:
    #   mean_h = w1 @ mean_x,   var_h = diag(w1 @ M2c @ w1^T)
    # with M2c the centered second moment (avoids E[h^2]-E[h]^2 cancellation).
    x_flat = x32.reshape(B * N, C_in)
    mean_x = jnp.mean(x_flat, axis=0)                            # (C_in,)
    xc = x_flat - mean_x
    m2c = jnp.dot(xc.T, xc, preferred_element_type=jnp.float32) / float(B * N)
    mean_h = w1 @ mean_x                                         # (F,)
    var_h = jnp.maximum(jnp.einsum('fc,cd,fd->f', w1, m2c, w1), 0.0)
    inv = jax.lax.rsqrt(var_h + BN_EPS)
    scale = params['gamma'].astype(jnp.float32) * inv            # (F,)
    shift = (params['beta'].astype(jnp.float32) - mean_h * scale)[:, None]
    w1f = w1 * scale[:, None]                                    # BN scale folded

    w2 = params['w2'].astype(jnp.float32)                        # (F, F)
    b2 = params['b2'].astype(jnp.float32)[:, None]               # (F, 1)

    # ---- Tiling: channel-first input, N padded to a multiple of TN ----
    out_bytes = jnp.dtype(out_dtype).itemsize
    TN, N_pad = _choose_tile_n(N, C_in, F, tile_n, out_bytes)
    x_t = jnp.transpose(x32, (0, 2, 1))                          # (B, C_in, N)
    if N_pad != N:
        x_t = jnp.pad(x_t, ((0, 0), (0, 0), (0, N_pad - N)))
    grid = (B, N_pad // TN)

    x_spec = pl.BlockSpec((1, C_in, TN), lambda b, n: (b, 0, n))
    const = lambda b, n: (0, 0)     # small params stay resident (no re-DMA)

    # VMEM bookkeeping: double-buffered x/out tiles + (double-buffered) params.
    footprint = (2 * C_in * TN * 4 + 2 * F * TN * out_bytes
                 + 2 * (F * C_in + 2 * F + F * F) * 4)
    vmem_limit = int(min(max(2 * footprint + (4 << 20), 16 << 20), 48 << 20))

    cost = pl.CostEstimate(
        flops=2 * B * F * F * N_pad + 2 * B * F * C_in * N_pad,
        transcendentals=0,
        bytes_accessed=B * C_in * N_pad * 4 + B * F * N_pad * out_bytes
        + (F * C_in + 2 * F + F * F) * 4)

    out = pl.pallas_call(
        functools.partial(apply_kernel, conv2_dtype=conv2_dtype),
        out_shape=jax.ShapeDtypeStruct((B, F, N_pad), out_dtype),
        grid=grid,
        in_specs=[x_spec,
                  pl.BlockSpec((F, C_in), const),
                  pl.BlockSpec((F, 1), const),
                  pl.BlockSpec((F, F), const),
                  pl.BlockSpec((F, 1), const)],
        out_specs=pl.BlockSpec((1, F, TN), lambda b, n: (b, 0, n)),
        compiler_params=pltpu.CompilerParams(
            dimension_semantics=("parallel", "parallel"),
            vmem_limit_bytes=vmem_limit),
        cost_estimate=cost,
    )(x_t, w1f, shift, w2, b2)

    if N_pad != N:
        out = out[:, :, :N]
    return out


def make_params(key, c_in, num_pos_feats):
    """Synthetic parameters in PyTorch-native layouts.

    Conv1d weight is (out, in) (kernel_size=1 squeezed); biases / BN params
    are (F,).
    """
    k1, k2, k3, k4 = jax.random.split(key, 4)
    f = num_pos_feats
    return {
        'w1': jax.random.normal(k1, (f, c_in), jnp.float32) * 0.1,
        'b1': jax.random.normal(k2, (f,), jnp.float32) * 0.05,
        'gamma': jnp.ones((f,), jnp.float32) * 1.2,
        'beta': jnp.full((f,), 0.1, jnp.float32),
        'w2': jax.random.normal(k3, (f, f), jnp.float32) * 0.1,
        'b2': jax.random.normal(k4, (f,), jnp.float32) * 0.05,
    }


def reference_jax(xyz, params):
    """Pure-JAX reference mirroring the PyTorch module (training-mode BN).

    TODO(synk): BatchNorm1d running_mean/running_var buffer updates (training
    state) are not emitted by the kernel; only the forward tensor is produced.
    """
    x = jnp.transpose(xyz, (0, 2, 1))                                # (B, C, N)
    h = jnp.einsum('fc,bcn->bfn', params['w1'], x) + params['b1'][None, :, None]
    mean = jnp.mean(h, axis=(0, 2), keepdims=True)
    var = jnp.mean((h - mean) ** 2, axis=(0, 2), keepdims=True)      # biased
    h = (h - mean) / jnp.sqrt(var + BN_EPS)
    h = h * params['gamma'][None, :, None] + params['beta'][None, :, None]
    h = jnp.maximum(h, 0.0)
    out = jnp.einsum('gf,bfn->bgn', params['w2'], h) + params['b2'][None, :, None]
    return out                                                       # (B, F, N)


if __name__ == "__main__":
    B, N = 2, 16
    C_IN = 3            # input_channel (xyz coordinates)
    NUM_POS_FEATS = 32  # num_pos_feats

    key = jax.random.PRNGKey(0)
    k_x, k_p = jax.random.split(key)
    xyz = jax.random.normal(k_x, (B, N, C_IN), jnp.float32)
    params = make_params(k_p, C_IN, NUM_POS_FEATS)

    ref = reference_jax(xyz, params)

    # Exact-precision path (fp32 MXU + fp32 writeback) -> tight check.
    out_f32 = position_embedding_learned(
        xyz, params, out_dtype=jnp.float32, conv2_dtype=jnp.float32)
    out_f32 = jax.block_until_ready(out_f32)
    assert out_f32.shape == (B, NUM_POS_FEATS, N), out_f32.shape
    max_err = float(jnp.max(jnp.abs(out_f32 - ref)))
    assert jnp.allclose(out_f32, ref, atol=1e-4, rtol=1e-4), max_err

    # Default fast path (bf16 MXU + bf16 writeback) -> loose check.
    out_bf16 = position_embedding_learned(xyz, params)
    out_bf16 = jax.block_until_ready(out_bf16)
    assert out_bf16.shape == (B, NUM_POS_FEATS, N), out_bf16.shape
    assert out_bf16.dtype == jnp.bfloat16
    max_err_bf16 = float(jnp.max(jnp.abs(out_bf16.astype(jnp.float32) - ref)))
    assert jnp.allclose(out_bf16.astype(jnp.float32), ref,
                        atol=5e-2, rtol=5e-2), max_err_bf16

    print("KERNEL_OK")
</pallas_src>

<mosaic_0001>
module attributes {stable_mosaic.version = 11 : i64} {
  func.func @apply_kernel(%arg0: i32, %arg1: i32, %arg2: memref<1x3x16xf32, #tpu.memory_space<vmem>>, %arg3: memref<32x3xf32, #tpu.memory_space<vmem>>, %arg4: memref<32x1xf32, #tpu.memory_space<vmem>>, %arg5: memref<32x32xf32, #tpu.memory_space<vmem>>, %arg6: memref<32x1xf32, #tpu.memory_space<vmem>>, %arg7: memref<1x32x16xf32, #tpu.memory_space<vmem>>) attributes {dimension_semantics = [#tpu.dimension_semantics<parallel>, #tpu.dimension_semantics<parallel>], iteration_bounds = array<i64: 2, 1>, scalar_prefetch = 0 : i64, scratch_operands = 0 : i64, tpu.core_type = #tpu.core_type<tc>, window_params = [{transform_indices = @transform_0, window_bounds = array<i64: 1, 3, 16>}, {pipeline_mode = #tpu.pipeline_mode<synchronous>, transform_indices = @transform_1, window_bounds = array<i64: 32, 3>}, {pipeline_mode = #tpu.pipeline_mode<synchronous>, transform_indices = @transform_2, window_bounds = array<i64: 32, 1>}, {pipeline_mode = #tpu.pipeline_mode<synchronous>, transform_indices = @transform_3, window_bounds = array<i64: 32, 32>}, {pipeline_mode = #tpu.pipeline_mode<synchronous>, transform_indices = @transform_4, window_bounds = array<i64: 32, 1>}, {transform_indices = @transform_5, window_bounds = array<i64: 1, 32, 16>}]} {
    %c0 = arith.constant 0 : index
    %c0_0 = arith.constant 0 : index
    %c0_1 = arith.constant 0 : index
    %0 = vector.load %arg2[%c0, %c0_0, %c0_1] : memref<1x3x16xf32, #tpu.memory_space<vmem>>, vector<1x3x16xf32>
    %1 = vector.shape_cast %0 : vector<1x3x16xf32> to vector<3x16xf32>
    %c0_2 = arith.constant 0 : index
    %c0_3 = arith.constant 0 : index
    %2 = vector.load %arg3[%c0_2, %c0_3] : memref<32x3xf32, #tpu.memory_space<vmem>>, vector<32x3xf32>
    %3 = vector.extract_strided_slice %2 {offsets = [0, 0], sizes = [32, 1], strides = [1, 1]} : vector<32x3xf32> to vector<32x1xf32>
    %4 = vector.extract_strided_slice %1 {offsets = [0, 0], sizes = [1, 16], strides = [1, 1]} : vector<3x16xf32> to vector<1x16xf32>
    %5 = vector.broadcast %3 : vector<32x1xf32> to vector<32x16xf32>
    %6 = vector.broadcast %4 : vector<1x16xf32> to vector<32x16xf32>
    %7 = arith.mulf %5, %6 : vector<32x16xf32>
    %8 = vector.extract_strided_slice %2 {offsets = [0, 1], sizes = [32, 1], strides = [1, 1]} : vector<32x3xf32> to vector<32x1xf32>
    %9 = vector.extract_strided_slice %1 {offsets = [1, 0], sizes = [1, 16], strides = [1, 1]} : vector<3x16xf32> to vector<1x16xf32>
    %10 = vector.broadcast %8 : vector<32x1xf32> to vector<32x16xf32>
    %11 = vector.broadcast %9 : vector<1x16xf32> to vector<32x16xf32>
    %12 = arith.mulf %10, %11 : vector<32x16xf32>
    %13 = arith.addf %7, %12 : vector<32x16xf32>
    %14 = vector.extract_strided_slice %2 {offsets = [0, 2], sizes = [32, 1], strides = [1, 1]} : vector<32x3xf32> to vector<32x1xf32>
    %15 = vector.extract_strided_slice %1 {offsets = [2, 0], sizes = [1, 16], strides = [1, 1]} : vector<3x16xf32> to vector<1x16xf32>
    %16 = vector.broadcast %14 : vector<32x1xf32> to vector<32x16xf32>
    %17 = vector.broadcast %15 : vector<1x16xf32> to vector<32x16xf32>
    %18 = arith.mulf %16, %17 : vector<32x16xf32>
    %19 = arith.addf %13, %18 : vector<32x16xf32>
    %c0_4 = arith.constant 0 : index
    %c0_5 = arith.constant 0 : index
    %20 = vector.load %arg4[%c0_4, %c0_5] : memref<32x1xf32, #tpu.memory_space<vmem>>, vector<32x1xf32>
    %21 = vector.broadcast %20 : vector<32x1xf32> to vector<32x16xf32>
    %22 = arith.addf %19, %21 : vector<32x16xf32>
    %cst = arith.constant 0.000000e+00 : f32
    %23 = vector.broadcast %cst : f32 to vector<32x16xf32>
    %24 = arith.maximumf %22, %23 : vector<32x16xf32>
    %c0_6 = arith.constant 0 : index
    %c0_7 = arith.constant 0 : index
    %25 = vector.load %arg5[%c0_6, %c0_7] : memref<32x32xf32, #tpu.memory_space<vmem>>, vector<32x32xf32>
    %cst_8 = arith.constant dense<0.000000e+00> : vector<32x16xf32>
    %26 = tpu.matmul %25, %24, %cst_8 {dimension_numbers = #tpu.dot_dimension_numbers<[1], [0], [0], [1], [0, 0, 1, 1], [], []>} : vector<32x32xf32>, vector<32x16xf32>, vector<32x16xf32> -> vector<32x16xf32>
    %c0_9 = arith.constant 0 : index
    %c0_10 = arith.constant 0 : index
    %27 = vector.load %arg6[%c0_9, %c0_10] : memref<32x1xf32, #tpu.memory_space<vmem>>, vector<32x1xf32>
    %28 = vector.broadcast %27 : vector<32x1xf32> to vector<32x16xf32>
    %29 = arith.addf %26, %28 : vector<32x16xf32>
    %30 = vector.shape_cast %29 : vector<32x16xf32> to vector<1x32x16xf32>
    %c0_11 = arith.constant 0 : index
    %c0_12 = arith.constant 0 : index
    %c0_13 = arith.constant 0 : index
    %31 = vector.load %arg7[%c0_11, %c0_12, %c0_13] : memref<1x32x16xf32, #tpu.memory_space<vmem>>, vector<1x32x16xf32>
    tpu.vector_store %arg7[%c0_11, %c0_12, %c0_13], %30 {strides = array<i32>} : memref<1x32x16xf32, #tpu.memory_space<vmem>>, vector<1x32x16xf32>,
    return
  }
  func.func @transform_0(%arg0: i32, %arg1: i32) -> (i32, i32, i32) {
    %c0_i32 = arith.constant 0 : i32
    %c0_i32_0 = arith.constant 0 : i32
    return %arg0, %c0_i32, %arg1 : i32, i32, i32
  }
  func.func @transform_1(%arg0: i32, %arg1: i32) -> (i32, i32) {
    %c0_i32 = arith.constant 0 : i32
    %c0_i32_0 = arith.constant 0 : i32
    %c0_i32_1 = arith.constant 0 : i32
    return %c0_i32, %c0_i32_0 : i32, i32
  }
  func.func @transform_2(%arg0: i32, %arg1: i32) -> (i32, i32) {
    %c0_i32 = arith.constant 0 : i32
    %c0_i32_0 = arith.constant 0 : i32
    %c0_i32_1 = arith.constant 0 : i32
    return %c0_i32, %c0_i32_0 : i32, i32
  }
  func.func @transform_3(%arg0: i32, %arg1: i32) -> (i32, i32) {
    %c0_i32 = arith.constant 0 : i32
    %c0_i32_0 = arith.constant 0 : i32
    %c0_i32_1 = arith.constant 0 : i32
    return %c0_i32, %c0_i32_0 : i32, i32
  }
  func.func @transform_4(%arg0: i32, %arg1: i32) -> (i32, i32) {
    %c0_i32 = arith.constant 0 : i32
    %c0_i32_0 = arith.constant 0 : i32
    %c0_i32_1 = arith.constant 0 : i32
    return %c0_i32, %c0_i32_0 : i32, i32
  }
  func.func @transform_5(%arg0: i32, %arg1: i32) -> (i32, i32, i32) {
    %c0_i32 = arith.constant 0 : i32
    %c0_i32_0 = arith.constant 0 : i32
    return %arg0, %c0_i32, %arg1 : i32, i32, i32
  }
}

</mosaic_0001>

<bundles_post_ra>
// kernel: tpu_custom_call.1
= control target key start
LH: loop header
LB: loop body
LE: loop exit
PB: predicated region body
PF: predicated region fallthrough
CT: control target
= control target key end

     0   :  { %s726_s18 = smov 0   ;;  %s728_s19 = smov 0   ;;  %s819_s0 = inlined_call_operand.vmem [shape: f32[2,3,16], index: 0, kind: input, shape index: {}]   ;;  %s820_s1 = inlined_call_operand.vmem [shape: f32[32,3], index: 1, kind: input, shape index: {}]   ;;  %s821_s2 = inlined_call_operand.vmem [shape: f32[32,1], index: 2, kind: input, shape index: {}]   ;;  %s822_s3 = inlined_call_operand.vmem [shape: f32[32,32], index: 3, kind: input, shape index: {}]   ;;  %s823_s4 = inlined_call_operand.vmem [shape: f32[32,1], index: 4, kind: input, shape index: {}]   ;;  %s824_s5 = inlined_call_operand.vmem [shape: f32[2,32,16], index: 5, kind: output, shape index: {}]  }
   0x1   :  { %s730_s20 = smov 0  }
   0x2 LB: > { %s27_s21 = sadd.s32 1, %s687_s19  ;;  %p589_p0 = scmp.ge.s32.totalorder %s691_s20, 1  ;;  %s691_s20 = sphi %s730_s20, %s15_s20   ;;  %s687_s19 = sphi %s728_s19, %s826_s19   ;;  %s683_s18 = sphi %s726_s18, %s825_s18  }
   0x3   : > { %p29_p1 = scmp.ge.s32.totalorder %s27_s21, 2  ;;  %p205_p2 = scmp.lt.s32.totalorder %s691_s20, 3 }
   0x5   : > { %s828_s21 = smov (%p29_p1, %s27_s21), 0  ;;  %p206_p3 = pnand %p589_p0, %p205_p2 }
   0x6   : > { %v254_v0 = vld [vmem:[%s820_s1] sm:$0xff] (!%p206_p3)  ;;  %v693_v1 = vmov (!%p206_p3), 2   ;;  %v694_v2 = vmov (!%p206_p3), 1   ;;  %v256_v3 = vld [vmem:[%s820_s1 + $0x10] sm:$0xff] (!%p206_p3)  ;;  %v255_v4 = vld [vmem:[%s820_s1 + $0x8] sm:$0xff] (!%p206_p3)  ;;  %v695_v5 = vmov (!%p206_p3), 0   ;;  %v278_v22 = vlaneseq (!%p206_p3) }
   0x7   : > { %209 = sbr.rel (%p206_p3) target bundleno = 403 (0x193), region = 40  ;;  %662 = vset.pattern.permute.xlu0 (!%p206_p3), %v693_v1  ;;  %661 = vset.pattern.permute.xlu1 (!%p206_p3), %v694_v2  ;;  %v257_v6 = vld [vmem:[%s820_s1 + $0x18] sm:$0xff] (!%p206_p3)  ;;  %v343_v7 = vld [vmem:[%s821_s2 + $0x8] sm:$0xff] (!%p206_p3)  ;;  %v378_v8 = vld [vmem:[%s823_s4] sm:$0xff] (!%p206_p3)  ;;  %vm402_vm0 = vcmask (!%p206_p3), 261120   ;;  %p238_p4 = scmp.lt.s32.totalorder (!%p206_p3), %s683_s18, 1 }
   0x8   : > { %315 = vperm.xlu0 (!%p206_p3), %662, %v254_v0   ;;  %287 = vperm.xlu1 (!%p206_p3), %661, %v254_v0   ;;  %v380_v9 = vld [vmem:[%s823_s4 + $0x10] sm:$0xff] (!%p206_p3)  ;;  %v342_v10 = vld [vmem:[%s821_s2] sm:$0xff] (!%p206_p3)  ;;  %v345_v12 = vld [vmem:[%s821_s2 + $0x18] sm:$0xff] (!%p206_p3)  ;;  %v279_v24 = vshrl.u32 (!%p206_p3), %v278_v22, 7  ;;  %vm500_vm1 = vcmask (!%p206_p3), 130048  }
   0x9   : > { %v344_v11 = vld [vmem:[%s821_s2 + $0x10] sm:$0xff] (!%p206_p3)  ;;  %v379_v13 = vld [vmem:[%s823_s4 + $0x8] sm:$0xff] (!%p206_p3)  ;;  %v381_v14 = vld [vmem:[%s823_s4 + $0x18] sm:$0xff] (!%p206_p3) }
   0xa   : > { %v374_v15 = vld [vmem:[%s822_s3] sm:$0xff] (!%p206_p3)  ;;  %v376_v16 = vld [vmem:[%s822_s3 + $0x10] sm:$0xff] (!%p206_p3)  ;;  %v280_v26 = vsub.s32 (!%p206_p3), 0, %v279_v24  ;;  %v304_v28 = vsub.s32 (!%p206_p3), 1, %v279_v24  ;;  %v332_v31 = vsub.s32 (!%p206_p3), 2, %v279_v24 }
   0xb   : > { %616 = vmatprep.mubr.msk.f32.mxu0 (!%p206_p3), %vm402_vm0, %v374_v15  ;;  %619 = vmatprep.mubr.msk.f32.mxu1 (!%p206_p3), %vm402_vm0, %v376_v16 }
   0xc   : > { %323 = vperm.xlu0 (!%p206_p3), %662, %v256_v3   ;;  %291 = vperm.xlu1 (!%p206_p3), %661, %v255_v4  }
   0xe   : > { %s830_s18 = smov (!%p238_p4, %s683_s18), 1 }
   0xf   : > { %s590_s29 = sshll.u32 %s830_s18, 2  ;;  %s599_s12 = sshll.u32 %s830_s18, 5 }
  0x10   : > { %666 = vset.pattern.permute.xlu0 %v695_v5  ;;  %663 = vset.pattern.permute.xlu1 %v693_v1  ;;  %s244_s7 = scalar_lea.vmem %s819_s0, %s590_s29  ;;  %s252_s15 = scalar_lea.vmem %s824_s5, %s599_s12 }
  0x11   : > { %260 = vperm.xlu0 %666, %v254_v0   ;;  %319 = vperm.xlu1 %663, %v255_v4   ;;  %v253_v29 = vld [vmem:[%s244_s7] sm:$0x7] }
  0x12   : > { %v281_v32 = vrot.slane %v253_v29, %v280_v26  ;;  %v305_v33 = vrot.slane %v253_v29, %v304_v28  ;;  %v333_v37 = vrot.slane %v253_v29, %v332_v31 }
  0x15   : > { %265 = vperm.xlu0 %666, %v255_v4   ;;  %664 = vset.pattern.permute.xlu1 %v695_v5 }
  0x16   : > { %270 = vperm.xlu1 %664, %v256_v3  }
  0x19   : > { %275 = vperm.xlu0 %666, %v257_v6  }
  0x1a   : > { %665 = vset.pattern.permute.xlu1 %v694_v2 }
  0x1b   : > { %295 = vperm.xlu1 %665, %v256_v3  }
  0x1d   : > { %353 = vperm.xlu0 %666, %v343_v7  }
  0x1f   : > { %299 = vperm.xlu1 %665, %v257_v6  }
  0x21   : > { %384 = vperm.xlu0 %666, %v378_v8   ;;  %v375_v8 = vld [vmem:[%s822_s3 + $0x8] sm:$0xff] }
  0x23   : > { %667 = vset.pattern.permute.xlu1 %v693_v1 }
  0x24   : > { %327 = vperm.xlu1 %667, %v257_v6  }
  0x25   : > { %394 = vperm.xlu0 %666, %v380_v9   ;;  %v377_v9 = vld [vmem:[%s822_s3 + $0x18] sm:$0xff] }
  0x28   : > { %668 = vset.pattern.permute.xlu1 %v695_v5 }
  0x29   : > { %348 = vperm.xlu1 %668, %v342_v10  }
  0x2d   : > { %358 = vperm.xlu1 %668, %v344_v11  }
  0x31   : > { %363 = vperm.xlu1 %668, %v345_v12  }
  0x35   : > { %389 = vperm.xlu1 %668, %v379_v13  }
  0x39   : > { %399 = vperm.xlu1 %668, %v381_v14  }
  0x87   : > { %v288_v17 = vpop.permute.xlu1 %287  ;;  %v316_v18 = vpop.permute.xlu0 %315 }
  0x88   : > { %v306_v40 = vmul.f32 %v305_v33, %v288_v17  ;;  %v334_v42 = vmul.f32 %v333_v37, %v316_v18 }
  0x8b   : > { %v292_v19 = vpop.permute.xlu1 %291  ;;  %v324_v20 = vpop.permute.xlu0 %323 }
  0x8c   : > { %v307_v38 = vmul.f32 %v305_v33, %v292_v19  ;;  %v336_v57 = vmul.f32 %v333_v37, %v324_v20 }
  0x90   : > { %v320_v21 = vpop.permute.xlu1 %319  ;;  %v261_v23 = vpop.permute.xlu0 %260 }
  0x91   : > { %v282_v39 = vmul.f32 %v281_v32, %v261_v23  ;;  %v335_v44 = vmul.f32 %v333_v37, %v320_v21 }
  0x93   : > { %v310_v43 = vadd.f32 %v306_v40, %v282_v39 }
  0x94   : > { %v266_v27 = vpop.permute.xlu0 %265 }
  0x95   : > { %v271_v25 = vpop.permute.xlu1 %270  ;;  %v283_v34 = vmul.f32 %v281_v32, %v266_v27  ;;  %v338_v51 = vadd.f32 %v334_v42, %v310_v43 }
  0x96   : > { %v284_v49 = vmul.f32 %v281_v32, %v271_v25 }
  0x97   : > { %v311_v41 = vadd.f32 %v307_v38, %v283_v34 }
  0x98   : > { %v276_v35 = vpop.permute.xlu0 %275 }
  0x99   : > { %v339_v48 = vadd.f32 %v335_v44, %v311_v41  ;;  %v285_v53 = vmul.f32 %v281_v32, %v276_v35 }
  0x9a   : > { %v296_v30 = vpop.permute.xlu1 %295 }
  0x9b   : > { %v308_v47 = vmul.f32 %v305_v33, %v296_v30 }
  0x9c   : > { %v354_v46 = vpop.permute.xlu0 %353 }
  0x9d   : > { %v367_v50 = vadd.f32 %v354_v46, %v339_v48  ;;  %v312_v54 = vadd.f32 %v308_v47, %v284_v49 }
  0x9e   : > { %v300_v36 = vpop.permute.xlu1 %299 }
  0x9f   : > { %v309_v55 = vmul.f32 %v305_v33, %v300_v36  ;;  %v371_v58 = vmax.f32 %v367_v50, 0.0  ;;  %v340_v0 = vadd.f32 %v336_v57, %v312_v54 }
  0xa0   : > { %v385_v10 = vpop.permute.xlu0 %384 }
  0xa1   : > { %v313_v62 = vadd.f32 %v309_v55, %v285_v53 }
  0xa3   : > { %v328_v45 = vpop.permute.xlu1 %327 }
  0xa4   : > { %v337_v59 = vmul.f32 %v333_v37, %v328_v45  ;;  %v395_v12 = vpop.permute.xlu0 %394 }
  0xa6   : > { %v341_v2 = vadd.f32 %v337_v59, %v313_v62 }
  0xa8   : > { %v349_v52 = vpop.permute.xlu1 %348 }
  0xa9   : > { %v366_v56 = vadd.f32 %v349_v52, %v338_v51 }
  0xab   : > { %v370_v60 = vmax.f32 %v366_v56, 0.0 }
  0xac   : > { %v359_v61 = vpop.permute.xlu1 %358 }
  0xad   : > { %v622_v63 = vpack.c.bf16 %v371_v58, %v370_v60  ;;  %v368_v1 = vadd.f32 %v359_v61, %v340_v0 }
  0xaf   : > { %623 = vmatprep.subr.bf16.mxu0 %v622_v63  ;;  %630 = vmatprep.subr.bf16.mxu1 %v622_v63  ;;  %v372_v5 = vmax.f32 %v368_v1, 0.0 }
  0xb0   : > { %v364_v3 = vpop.permute.xlu1 %363  ;;  %625 = vmatpush3.bf16.msra.mxu0 %v622_v63  ;;  %632 = vmatpush3.bf16.msra.mxu1 %v622_v63 }
  0xb1   : > { %v369_v4 = vadd.f32 %v364_v3, %v341_v2 }
  0xb3   : > { %v373_v6 = vmax.f32 %v369_v4, 0.0 }
  0xb4   : > { %v390_v11 = vpop.permute.xlu1 %389 }
  0xb5   : > { %v626_v7 = vpack.c.bf16 %v373_v6, %v372_v5 }
  0xb7   : > { %627 = vmatprep.subr.bf16.mxu0 %v626_v7  ;;  %631 = vmatprep.subr.bf16.mxu1 %v626_v7 }
  0xb8   : > { %629 = vmatpush3.bf16.msra.mxu0 %v626_v7  ;;  %633 = vmatpush3.bf16.msra.mxu1 %v626_v7  ;;  %v400_v13 = vpop.permute.xlu1 %399 }
  0xbb   : > { %617 = vmatmul.mubr.msk.f32.vlgmr.msra.gmra.mrb[0].mxu0 %vm402_vm0, %v375_v8  ;;  %620 = vmatmul.mubr.msk.f32.vlgmr.msra.gmra.mrb[0].mxu1 %vm402_vm0, %v377_v9 }
 0x18e   : > { %v618_v14 = vpop.f32.mrb[0].mxu0  ;;  %v621_v15 = vpop.f32.mrb[0].mxu1 }
 0x18f   : > { %v487_v16 = vadd.f32 %v618_v14, %v390_v11  ;;  %v497_v17 = vadd.f32 %v621_v15, %v400_v13  ;;  %v481_v18 = vpop.f32.mrb[1].mxu0  ;;  %v491_v19 = vpop.f32.mrb[1].mxu1 }
 0x190   : > { %v482_v20 = vadd.f32 %v481_v18, %v385_v10  ;;  %v492_v21 = vadd.f32 %v491_v19, %v395_v12 }
 0x191   : > { %502 = vst.msk [vmem:[%s252_s15 + $0x8] sm:$0xff] %vm500_vm1, %v487_v16  ;;  %504 = vst.msk [vmem:[%s252_s15 + $0x18] sm:$0xff] %vm500_vm1, %v497_v17 }
 0x192   : > { %501 = vst.msk [vmem:[%s252_s15] sm:$0xff] %vm500_vm1, %v482_v20  ;;  %503 = vst.msk [vmem:[%s252_s15 + $0x10] sm:$0xff] %vm500_vm1, %v492_v21 }
 0x193 PF: > { %s15_s20 = sadd.s32 1, %s691_s20   ;;  %s825_s18 = smov %s687_s19 }
 0x194   : > { %p12_p5 = scmp.ge.s32.totalorder %s15_s20, 4   ;;  %s826_s19 = smov %s828_s21 }
 0x196   :  { %14 = sbr.rel (!%p12_p5) target bundleno = 2 (0x2), region = 70 }

</bundles_post_ra>
